<compile_context>
chip_gen: v6e
topology: v6e:2x2x1
jax: 0.10.0
libtpu: 0.0.40
codegen_flags: <defaults>
</compile_context>

<pallas_src>
import math

import numpy as np
import jax
import jax.numpy as jnp
from jax.experimental import pallas as pl
from jax.experimental.pallas import tpu as pltpu


def _round_up(x: int, m: int) -> int:
    return ((x + m - 1) // m) * m


def _pe_kernel(a_ref, sinb_ref, cosb_ref, o_ref):
    # angle[r, c] = (row0 + r) * a[c] + b[c] = base[r, c] + delta[c],
    #   with delta[c] = row0 * a[c] and base folded into sinB/cosB on host.
    # sin(angle) = sinB*cos(delta) + cosB*sin(delta)   (angle addition)
    # Only 2 * lw transcendentals per grid step; per-element work is pure VPU.
    tile_pr = o_ref.shape[0]
    row0 = (pl.program_id(0) * tile_pr).astype(jnp.float32)
    delta = row0 * a_ref[...]                                  # (1, lw)
    sind = jnp.sin(delta)
    cosd = jnp.sin(delta + np.float32(np.pi / 2.0))            # cos(x) = sin(x + pi/2)
    o_ref[...] = sinb_ref[...] * cosd + cosb_ref[...] * sind


def positional_encoding(dimension: int, max_len: int) -> jax.Array:
    """Equivalent of PositionalEncoding(dimension, max_len).forward()."""
    assert dimension % 2 == 0, "dimension must be even (as in the PyTorch module)"
    assert max_len >= 1

    # ---- lane packing via lcm: pack rows_per_group positions into one
    #      lane-dense (multiple-of-128) output row.  Only pack when the
    #      result is EXACT after a free reshape (max_len % g == 0); otherwise
    #      fall back to the full-extent last dim so no post-kernel slice
    #      (full-table HBM re-copy) is ever needed.
    g = math.lcm(dimension, 128) // dimension
    lw = g * dimension
    if lw > 2048 or (max_len % g != 0):
        g, lw = 1, dimension
    packed_rows = max_len // g
    assert packed_rows <= (1 << 24), "row index must stay exactly representable in f32"

    # ---- tiling: ~2 MiB output tiles; ensure >= 2 grid steps when the whole
    #      table is small so v7x's two TensorCores both get work.
    bytes_per_row = lw * 4
    if packed_rows <= 8:
        tile_pr = packed_rows                       # full-extent first dim (allowed)
    else:
        target_tile_bytes = 2 * 1024 * 1024
        max_tile_pr = max(8, ((target_tile_bytes // bytes_per_row) // 8) * 8)
        half = _round_up(pl.cdiv(packed_rows, 2), 8)
        tile_pr = max(8, min(max_tile_pr, half))    # multiple of 8
    grid = (pl.cdiv(packed_rows, tile_pr),)         # ragged last block is masked

    # ---- host-side coefficients (float64 -> f32); removes all exp() and all
    #      per-element integer div/mod and transcendentals from the kernel.
    c = np.arange(lw)
    col = c % dimension
    rowoff = (c // dimension).astype(np.float64)
    inv_freq = np.exp(
        np.arange(0, dimension, 2, dtype=np.float64) * (-np.log(10000.0) / dimension)
    )
    inv_c = inv_freq[col // 2]
    phase = np.where(col % 2 == 0, 0.0, np.pi / 2.0)   # cos(x) = sin(x + pi/2)
    a64 = g * inv_c                                    # angle slope per packed row
    b64 = rowoff * inv_c + phase                       # intra-group offset + phase

    r = np.arange(tile_pr, dtype=np.float64)[:, None]
    base = r * a64[None, :] + b64[None, :]             # base angles for one tile
    sin_base = np.sin(base).astype(np.float32)         # (tile_pr, lw), resident
    cos_base = np.cos(base).astype(np.float32)
    a_row = a64.astype(np.float32)[None, :]            # (1, lw)

    # VMEM budget: out double-buffer (2x) + sinB/cosB (<=2x each) + a
    #   ~ 6 * tile_bytes ~ 13 MiB worst case -> well under the 32 MiB limit
    #   requested below (also safe vs. v5e's 16 MiB scoped default and v7x's
    #   64 MiB physical VMEM).
    packed = pl.pallas_call(
        _pe_kernel,
        out_shape=jax.ShapeDtypeStruct((packed_rows, lw), jnp.float32),
        grid_spec=pltpu.PrefetchScalarGridSpec(
            num_scalar_prefetch=0,
            grid=grid,
            in_specs=[
                pl.BlockSpec((1, lw), lambda i: (0, 0)),          # a (slope)
                pl.BlockSpec((tile_pr, lw), lambda i: (0, 0)),    # sin base (resident)
                pl.BlockSpec((tile_pr, lw), lambda i: (0, 0)),    # cos base (resident)
            ],
            out_specs=pl.BlockSpec((tile_pr, lw), lambda i: (i, 0)),
        ),
        compiler_params=pltpu.CompilerParams(
            dimension_semantics=("parallel",),
            vmem_limit_bytes=32 * 1024 * 1024,
        ),
    )(jnp.asarray(a_row), jnp.asarray(sin_base), jnp.asarray(cos_base))

    # Free bitcast back to [max_len, dimension]; exact by construction, so no
    # slice (and hence no second pass over HBM) is required.
    return packed.reshape(max_len, dimension)


def _reference_pe(dimension: int, max_len: int) -> np.ndarray:
    # Pure-numpy (float64) port of the PyTorch __init__ for verification.
    position = np.arange(max_len, dtype=np.float64)[:, None]
    div_term = np.exp(
        np.arange(0, dimension, 2, dtype=np.float64) * (-np.log(10000.0) / dimension)
    )
    pe = np.zeros((max_len, dimension), dtype=np.float64)
    pe[:, 0::2] = np.sin(position * div_term)
    pe[:, 1::2] = np.cos(position * div_term)
    return pe


if __name__ == "__main__":
    # forward() takes no runtime inputs; PRNGKey kept only for harness parity.
    _ = jax.random.PRNGKey(0)

    # Small shapes consistent with the module: seq (max_len) = 16, hidden = 32.
    dimension, max_len = 32, 16
    pe = jax.block_until_ready(positional_encoding(dimension, max_len))
    ref = _reference_pe(dimension, max_len)
    np.testing.assert_allclose(np.asarray(pe), ref, rtol=1e-5, atol=1e-5)

    # Lane-packed path with a ragged last grid block and >= 2 grid steps.
    dimension2, max_len2 = 64, 200
    pe2 = jax.block_until_ready(positional_encoding(dimension2, max_len2))
    ref2 = _reference_pe(dimension2, max_len2)
    np.testing.assert_allclose(np.asarray(pe2), ref2, rtol=1e-5, atol=1e-4)

    # Fallback path (max_len not a multiple of the packing group): exact
    # output, full-extent last dim, ragged tail — still no post-kernel copy.
    dimension3, max_len3 = 32, 10
    pe3 = jax.block_until_ready(positional_encoding(dimension3, max_len3))
    ref3 = _reference_pe(dimension3, max_len3)
    np.testing.assert_allclose(np.asarray(pe3), ref3, rtol=1e-5, atol=1e-5)

    print("KERNEL_OK")
</pallas_src>

<mosaic_0001>
module attributes {stable_mosaic.version = 11 : i64} {
  func.func @_pe_kernel(%arg0: i32, %arg1: memref<1x128xf32, #tpu.memory_space<vmem>>, %arg2: memref<4x128xf32, #tpu.memory_space<vmem>>, %arg3: memref<4x128xf32, #tpu.memory_space<vmem>>, %arg4: memref<4x128xf32, #tpu.memory_space<vmem>>) attributes {dimension_semantics = [#tpu.dimension_semantics<parallel>], iteration_bounds = array<i64: 1>, scalar_prefetch = 0 : i64, scratch_operands = 0 : i64, tpu.core_type = #tpu.core_type<tc>, window_params = [{pipeline_mode = #tpu.pipeline_mode<synchronous>, transform_indices = @transform_0, window_bounds = array<i64: 1, 128>}, {pipeline_mode = #tpu.pipeline_mode<synchronous>, transform_indices = @transform_1, window_bounds = array<i64: 4, 128>}, {pipeline_mode = #tpu.pipeline_mode<synchronous>, transform_indices = @transform_2, window_bounds = array<i64: 4, 128>}, {transform_indices = @transform_3, window_bounds = array<i64: 4, 128>}]} {
    %c4_i32 = arith.constant 4 : i32
    %0 = arith.muli %arg0, %c4_i32 : i32
    %1 = arith.sitofp %0 : i32 to f32
    %c0 = arith.constant 0 : index
    %c0_0 = arith.constant 0 : index
    %2 = vector.load %arg1[%c0, %c0_0] : memref<1x128xf32, #tpu.memory_space<vmem>>, vector<1x128xf32>
    %3 = vector.broadcast %1 : f32 to vector<1x128xf32>
    %4 = arith.mulf %3, %2 : vector<1x128xf32>
    %5 = math.sin %4 : vector<1x128xf32>
    %cst = arith.constant 1.57079637 : f32
    %6 = vector.broadcast %cst : f32 to vector<1x128xf32>
    %7 = arith.addf %4, %6 : vector<1x128xf32>
    %8 = math.sin %7 : vector<1x128xf32>
    %c0_1 = arith.constant 0 : index
    %c0_2 = arith.constant 0 : index
    %9 = vector.load %arg2[%c0_1, %c0_2] : memref<4x128xf32, #tpu.memory_space<vmem>>, vector<4x128xf32>
    %10 = vector.broadcast %8 : vector<1x128xf32> to vector<4x128xf32>
    %11 = arith.mulf %9, %10 : vector<4x128xf32>
    %c0_3 = arith.constant 0 : index
    %c0_4 = arith.constant 0 : index
    %12 = vector.load %arg3[%c0_3, %c0_4] : memref<4x128xf32, #tpu.memory_space<vmem>>, vector<4x128xf32>
    %13 = vector.broadcast %5 : vector<1x128xf32> to vector<4x128xf32>
    %14 = arith.mulf %12, %13 : vector<4x128xf32>
    %15 = arith.addf %11, %14 : vector<4x128xf32>
    %c0_5 = arith.constant 0 : index
    %c0_6 = arith.constant 0 : index
    %16 = vector.load %arg4[%c0_5, %c0_6] : memref<4x128xf32, #tpu.memory_space<vmem>>, vector<4x128xf32>
    tpu.vector_store %arg4[%c0_5, %c0_6], %15 {strides = array<i32>} : memref<4x128xf32, #tpu.memory_space<vmem>>, vector<4x128xf32>,
    return
  }
  func.func @transform_0(%arg0: i32) -> (i32, i32) {
    %c0_i32 = arith.constant 0 : i32
    %c0_i32_0 = arith.constant 0 : i32
    %c0_i32_1 = arith.constant 0 : i32
    return %c0_i32, %c0_i32_0 : i32, i32
  }
  func.func @transform_1(%arg0: i32) -> (i32, i32) {
    %c0_i32 = arith.constant 0 : i32
    %c0_i32_0 = arith.constant 0 : i32
    %c0_i32_1 = arith.constant 0 : i32
    return %c0_i32, %c0_i32_0 : i32, i32
  }
  func.func @transform_2(%arg0: i32) -> (i32, i32) {
    %c0_i32 = arith.constant 0 : i32
    %c0_i32_0 = arith.constant 0 : i32
    %c0_i32_1 = arith.constant 0 : i32
    return %c0_i32, %c0_i32_0 : i32, i32
  }
  func.func @transform_3(%arg0: i32) -> (i32, i32) {
    %c0_i32 = arith.constant 0 : i32
    %c0_i32_0 = arith.constant 0 : i32
    return %arg0, %c0_i32 : i32, i32
  }
}

</mosaic_0001>

<bundles_post_ra>
// kernel: tpu_custom_call.1
= control target key start
LH: loop header
LB: loop body
LE: loop exit
PB: predicated region body
PF: predicated region fallthrough
CT: control target
= control target key end

     0   :  { %8 = vsyncpa [#allocation3], 0  ;;  %s545_s0 = inlined_call_operand.hbm [shape: f32[1,128], index: 0, kind: input, shape index: {}]   ;;  %s546_s1 = inlined_call_operand.hbm [shape: f32[4,128], index: 1, kind: input, shape index: {}]   ;;  %s547_s2 = inlined_call_operand.hbm [shape: f32[4,128], index: 2, kind: input, shape index: {}]   ;;  %s548_s3 = inlined_call_operand.hbm [shape: f32[4,128], index: 3, kind: output, shape index: {}]  }
   0x1   :  { %9 = vsyncpa [#allocation6], 0 }
   0x2   :  { %10 = vsyncpa [#allocation4], 0  ;;  %s418_s12 = smov [#allocation5]   ;;  %s419_s14 = smov [#allocation2]  }
   0x3   :  { %s27_s13 = sshll.u32 %s418_s12, 4  ;;  %s17_s15 = sshll.u32 %s419_s14, 4  ;;  %s28_s13 = int_to_ptr.vmem [resolvable:$true] %s27_s13  ;;  %s18_s15 = int_to_ptr.vmem [resolvable:$true] %s17_s15 }
   0x4   :  { %s340_s16 = scalar_lea.vmem %s28_s13, 64  ;;  %p345_p1 = scmp.lt.s32.totalorder %s28_s13, %s28_s13 }
   0x5   :  { %p341_p0 = scmp.ne.s32.totalorder %s28_s13, %s340_s16  ;;  %p346_p2 = scmp.lt.s32.totalorder %s340_s16, %s340_s16 }
   0x7   :  { %p347_p3 = por %p346_p2, %p345_p1 }
   0x9   :  { %p348_p4 = pnand %p347_p3, %p341_p0 }
   0xb   :  { %351 = shalt.err (!%p348_p4)
}
   0xc   :  { %30 = dma.hbm_to_vmem [thread:$0]  %s546_s1, 64, %s28_s13, [#allocation6]  }
   0xd   :  { %s360_s19 = scalar_lea.vmem %s18_s15, 16  ;;  %s364_s20 = scalar_lea.vmem %s18_s15, 32 }
   0xe   :  { %p361_p5 = scmp.ne.s32.totalorder %s18_s15, %s360_s19  ;;  %p365_p6 = scmp.lt.s32.totalorder %s18_s15, %s18_s15 }
   0xf   :  { %p366_p7 = scmp.lt.s32.totalorder %s364_s20, %s360_s19 }
  0x11   :  { %p367_p8 = por %p366_p7, %p365_p6 }
  0x13   :  { %p368_p9 = pnand %p367_p8, %p361_p5 }
  0x15   :  { %371 = shalt.err (!%p368_p9)
}
  0x16   :  { %20 = dma.hbm_to_vmem [thread:$0]  %s545_s0, 16, %s18_s15, [#allocation3]  }
  0x17   :  { %s420_s23 = smov [#allocation7]  }
  0x18   :  { %s37_s24 = sshll.u32 %s420_s23, 4  ;;  %s38_s24 = int_to_ptr.vmem [resolvable:$true] %s37_s24 }
  0x19   :  { %s380_s25 = scalar_lea.vmem %s38_s24, 64  ;;  %p385_p11 = scmp.lt.s32.totalorder %s38_s24, %s38_s24 }
  0x1a   :  { %p381_p10 = scmp.ne.s32.totalorder %s38_s24, %s380_s25  ;;  %p386_p12 = scmp.lt.s32.totalorder %s380_s25, %s380_s25 }
  0x1c   :  { %p387_p13 = por %p386_p12, %p385_p11 }
  0x1e   :  { %p388_p0 = pnand %p387_p13, %p381_p10 }
  0x20   :  { %391 = shalt.err (!%p388_p0)
}
  0x21   :  { %40 = dma.hbm_to_vmem [thread:$0]  %s547_s2, 64, %s38_s24, [#allocation6]  }
  0x22   :  { %412 = dma.done.wait [#allocation3], 16  }
  0x23   :  { %413 = vsyncadd [#allocation3], 4294967280 }
  0x24   :  { %414 = dma.done.wait [#allocation6], 128  }
  0x25   :  { %415 = vsyncadd [#allocation6], 4294967168  ;;  %v52_v0 = vld [vmem:[#allocation2] sm:$0x1]  ;;  %v421_v22 = vmov 683565275  }
  0x26   :  { %v457_v1 = vmul.f32 0.0, %v52_v0  ;;  %v422_v24 = vmov 2475754826   ;;  %v423_v26 = vmov 2131351028   ;;  %s427_s0 = smov [#allocation8]  }
  0x27   :  { %v424_v28 = vmov 2102212464   ;;  %v425_v30 = vmov 920167782   ;;  %v426_v37 = vmov 1326507024  }
  0x28   :  { %v55_v2 = vand.u32 2147483647, %v457_v1  ;;  %v58_v3 = vand.u32 2139095040, %v457_v1  ;;  %v462_v4 = vadd.f32 1.5707964, %v457_v1  ;;  %vm57_vm14 = vcmp.lt.s32.totalorder %v457_v1, 0 }
  0x29   :  { %s288_s2 = sshll.u32 %s427_s0, 4  ;;  %s289_s2 = int_to_ptr.vmem [resolvable:$true] %s288_s2 }
  0x2a   :  { %v59_v5 = vshrl.u32 %v58_v3, 23  ;;  %v62_v6 = vand.u32 8388607, %v55_v2  ;;  %v160_v7 = vand.u32 2147483647, %v462_v4  ;;  %v163_v8 = vand.u32 2139095040, %v462_v4  ;;  %p397_p2 = scmp.lt.s32.totalorder %s289_s2, %s289_s2 }
  0x2b   :  { %vm519_vm15 = vcmp.le.f32.partialorder %v55_v2, 0.7853982  ;;  %s392_s27 = scalar_lea.vmem %s289_s2, 64 }
  0x2c   :  { %v298_v9 = vadd.s32 4294967169, %v59_v5  ;;  %v164_v10 = vshrl.u32 %v163_v8, 23  ;;  %v63_v12 = vor.u32 8388608, %v62_v6  ;;  %v470_v14 = vand.u32 8388607, %v160_v7  ;;  %p393_p1 = scmp.ne.s32.totalorder %s289_s2, %s392_s27  ;;  %p398_p3 = scmp.lt.s32.totalorder %s392_s27, %s392_s27 }
  0x2e   :  { %v65_v11 = vadd.s32 1, %v298_v9  ;;  %v302_v13 = vadd.s32 4294967169, %v164_v10  ;;  %v472_v19 = vshll.u32 %v63_v12, 8  ;;  %v168_v20 = vor.u32 8388608, %v470_v14  ;;  %p399_p4 = por %p398_p3, %p397_p2 }
  0x30   :  { %vm66_vm0 = vcmp.gt.s32.totalorder %v65_v11, 0  ;;  %v170_v16 = vadd.s32 1, %v302_v13  ;;  %p400_p5 = pnand %p399_p4, %p393_p1 }
  0x31   :  { %v67_v15 = vsel %vm66_vm0, %v65_v11, 0  ;;  %vm162_vm0 = vcmp.lt.s32.totalorder %v462_v4, 0 }
  0x32   :  { %v68_v17 = vshrl.u32 %v67_v15, 5  ;;  %v69_v18 = vand.u32 31, %v67_v15  ;;  %vm171_vm1 = vcmp.gt.s32.totalorder %v170_v16, 0 }
  0x33   :  { %v172_v42 = vsel %vm171_vm1, %v170_v16, 0  ;;  %vm531_vm1 = vcmp.le.f32.partialorder %v160_v7, 0.7853982 }
  0x34   :  { %v70_v21 = vsub.s32 32, %v69_v18  ;;  %v72_v23 = vshll.u32 %v421_v22, %v69_v18  ;;  %v75_v25 = vshll.u32 %v422_v24, %v69_v18  ;;  %v78_v27 = vshll.u32 %v423_v26, %v69_v18 }
  0x35   :  { %v81_v29 = vshll.u32 %v424_v28, %v69_v18  ;;  %v84_v31 = vshll.u32 %v425_v30, %v69_v18  ;;  %vm87_vm2 = vcmp.lt.s32.totalorder %v68_v17, 1  ;;  %vm88_vm3 = vcmp.lt.s32.totalorder %v68_v17, 2 }
  0x36   :  { %v71_v32 = vshrl.u32 %v421_v22, %v70_v21  ;;  %v73_v33 = vshrl.u32 %v422_v24, %v70_v21  ;;  %v76_v34 = vshrl.u32 %v423_v26, %v70_v21  ;;  %v79_v35 = vshrl.u32 %v424_v28, %v70_v21 }
  0x37   :  { %v82_v36 = vshrl.u32 %v425_v30, %v70_v21  ;;  %v85_v38 = vshrl.u32 %v426_v37, %v70_v21  ;;  %vm89_vm4 = vcmp.lt.s32.totalorder %v68_v17, 3  ;;  %vm90_vm5 = vcmp.lt.s32.totalorder %v68_v17, 4 }
  0x38   :  { %v74_v39 = vor.u32 %v73_v33, %v72_v23  ;;  %v77_v40 = vor.u32 %v76_v34, %v75_v25  ;;  %v80_v41 = vor.u32 %v79_v35, %v78_v27  ;;  %v173_v45 = vshrl.u32 %v172_v42, 5 }
  0x39   :  { %v83_v43 = vor.u32 %v82_v36, %v81_v29  ;;  %v86_v44 = vor.u32 %v85_v38, %v84_v31  ;;  %v174_v46 = vand.u32 31, %v172_v42 }
  0x3a   :  { %v91_v47 = vsel %vm87_vm2, %v71_v32, %v74_v39  ;;  %v92_v48 = vsel %vm90_vm5, %v80_v41, 2102212464  ;;  %v95_v49 = vsel %vm87_vm2, %v74_v39, %v77_v40  ;;  %v99_v50 = vsel %vm87_vm2, %v77_v40, %v80_v41 }
  0x3b   :  { %v93_v51 = vsel %vm89_vm4, %v77_v40, %v92_v48  ;;  %v96_v52 = vsel %vm90_vm5, %v83_v43, 920167782  ;;  %v100_v53 = vsel %vm90_vm5, %v86_v44, 1326507024  ;;  %v175_v54 = vsub.s32 32, %v174_v46 }
  0x3c   :  { %v94_v55 = vsel %vm88_vm3, %v91_v47, %v93_v51  ;;  %v97_v56 = vsel %vm89_vm4, %v80_v41, %v96_v52  ;;  %v101_v57 = vsel %vm89_vm4, %v83_v43, %v100_v53  ;;  %v177_v58 = vshll.u32 %v421_v22, %v174_v46 }
  0x3d   :  { %v98_v59 = vsel %vm88_vm3, %v95_v49, %v97_v56  ;;  %v102_v60 = vsel %vm88_vm3, %v99_v50, %v101_v57  ;;  %v110_v61 = vmul.u32 %v472_v19, %v94_v55  ;;  %v176_v62 = vshrl.u32 %v421_v22, %v175_v54 }
  0x3e   :  { %v487_v63 = vmul.u32.u64.low %v472_v19, %v102_v60  ;;  %v488_v0 = vmul.u32.u64.high %v472_v19, %v102_v60, %v487_v63  ;;  %v491_v3 = vmul.u32.u64.low %v472_v19, %v98_v59  ;;  %v492_v5 = vmul.u32.u64.high %v472_v19, %v98_v59, %v491_v3 }
  0x3f   :  { %v178_v6 = vshrl.u32 %v422_v24, %v175_v54  ;;  %v180_v8 = vshll.u32 %v422_v24, %v174_v46  ;;  %v181_v9 = vshrl.u32 %v423_v26, %v175_v54  ;;  %v183_v10 = vshll.u32 %v423_v26, %v174_v46 }
  0x40   :  { %v184_v11 = vshrl.u32 %v424_v28, %v175_v54  ;;  %v186_v12 = vshll.u32 %v424_v28, %v174_v46  ;;  %v187_v13 = vshrl.u32 %v425_v30, %v175_v54  ;;  %v189_v15 = vshll.u32 %v425_v30, %v174_v46 }
  0x41   :  { %v179_v16 = vor.u32 %v178_v6, %v177_v58  ;;  %v182_v17 = vor.u32 %v181_v9, %v180_v8  ;;  %v190_v18 = vshrl.u32 %v426_v37, %v175_v54  ;;  %vm192_vm6 = vcmp.lt.s32.totalorder %v173_v45, 1 }
  0x42   :  { %vm112_vm7 = vc.u32 %v488_v0, %v491_v3  ;;  %v113_v21 = vadd.s32 1, %v492_v5  ;;  %v185_v22 = vor.u32 %v184_v11, %v183_v10  ;;  %v208_v19 = vshll.u32 %v168_v20, 8 }
  0x43   :  { %v188_v23 = vor.u32 %v187_v13, %v186_v12  ;;  %v191_v24 = vor.u32 %v190_v18, %v189_v15  ;;  %vm193_vm8 = vcmp.lt.s32.totalorder %v173_v45, 2  ;;  %vm194_vm9 = vcmp.lt.s32.totalorder %v173_v45, 3 }
  0x44   :  { %v114_v25 = vsel %vm112_vm7, %v113_v21, %v492_v5  ;;  %vm195_vm10 = vcmp.lt.s32.totalorder %v173_v45, 4  ;;  %v196_v26 = vsel %vm192_vm6, %v176_v62, %v179_v16  ;;  %v200_v27 = vsel %vm192_vm6, %v179_v16, %v182_v17 }
  0x45   :  { %v115_v28 = vadd.s32 %v114_v25, %v110_v61  ;;  %v197_v29 = vsel %vm195_vm10, %v185_v22, 2102212464  ;;  %v201_v30 = vsel %vm195_vm10, %v188_v23, 920167782  ;;  %v204_v31 = vsel %vm192_vm6, %v182_v17, %v185_v22 }
  0x46   :  { %v198_v32 = vsel %vm194_vm9, %v182_v17, %v197_v29  ;;  %v202_v33 = vsel %vm194_vm9, %v185_v22, %v201_v30  ;;  %v205_v14 = vsel %vm195_vm10, %v191_v24, 1326507024  ;;  %v111_v56 = vadd.s32 %v491_v3, %v488_v0 }
  0x47   :  { %v116_v20 = vadd.s32 536870912, %v115_v28  ;;  %v203_v34 = vsel %vm193_vm8, %v200_v27, %v202_v33  ;;  %v206_v35 = vsel %vm194_vm9, %v188_v23, %v205_v14  ;;  %v199_v36 = vsel %vm193_vm8, %v196_v26, %v198_v32 }
  0x48   :  { %v207_v37 = vsel %vm193_vm8, %v204_v31, %v206_v35  ;;  %v505_v38 = vmul.u32.u64.low %v208_v19, %v203_v34  ;;  %v506_v39 = vmul.u32.u64.high %v208_v19, %v203_v34, %v505_v38  ;;  %v215_v44 = vmul.u32 %v208_v19, %v199_v36 }
  0x49   :  { %v117_v40 = vshrl.u32 %v116_v20, 30  ;;  %v508_v41 = vmul.u32.u64.low %v208_v19, %v207_v37  ;;  %v509_v42 = vmul.u32.u64.high %v208_v19, %v207_v37, %v508_v41  ;;  %vm147_vm5 = vweird.f32 %v457_v1 }
  0x4a   :  { %v218_v46 = vadd.s32 1, %v506_v39  ;;  %vm252_vm9 = vweird.f32 %v462_v4 }
  0x4b   :  { %v118_v43 = vshll.u32 %v117_v40, 30  ;;  %vm217_vm11 = vc.u32 %v509_v42, %v505_v38  ;;  %v216_v16 = vadd.s32 %v505_v38, %v509_v42  ;;  %v141_v23 = vsub.s32 4, %v117_v40 }
  0x4c   :  { %v219_v48 = vsel %vm217_vm11, %v218_v46, %v506_v39  ;;  %v266_v46 = vlaneseq }
  0x4d   :  { %v119_v47 = vsub.s32 %v115_v28, %v118_v43  ;;  %v220_v50 = vadd.s32 %v219_v48, %v215_v44  ;;  %v142_v30 = vsel %vm57_vm14, %v141_v23, %v117_v40 }
  0x4e   :  { %v144_v33 = vsel %vm519_vm15, 0, %v142_v30 }
  0x4f   :  { %v121_v49 = vsub.s32 0, %v119_v47  ;;  %v221_v51 = vadd.s32 536870912, %v220_v50  ;;  %v148_v34 = vadd.s32 3, %v144_v33 }
  0x51   :  { %v299_v45 = vmin.u32 %v121_v49, %v119_v47  ;;  %v222_v53 = vshrl.u32 %v221_v51, 30  ;;  %v149_v40 = vand.u32 3, %v148_v34 }
  0x53   :  { %v123_v52 = vclz %v299_v45  ;;  %v223_v55 = vshll.u32 %v222_v53, 30  ;;  %v246_v20 = vsub.s32 4, %v222_v53  ;;  %vm151_vm2 = vcmp.eq.s32.totalorder %v149_v40, 0 }
  0x54   :  { %vm154_vm3 = vcmp.eq.s32.totalorder %v149_v40, 2  ;;  %vm150_vm4 = vcmp.lt.s32.totalorder %v149_v40, 2 }
  0x55   :  { %v300_v54 = vadd.s32 4294967294, %v123_v52  ;;  %v224_v58 = vsub.s32 %v220_v50, %v223_v55  ;;  %v247_v38 = vsel %vm162_vm0, %v246_v20, %v222_v53  ;;  %v267_v50 = vshrl.u32 %v266_v46, 7 }
  0x56   :  { %v249_v42 = vsel %vm531_vm1, 0, %v247_v38 }
  0x57   :  { %vm301_vm12 = vcmp.lt.s32.totalorder %v300_v54, 0  ;;  %v226_v62 = vsub.s32 0, %v224_v58  ;;  %v268_v52 = vsub.s32 0, %v267_v50 }
  0x58   :  { %v126_v57 = vsel %vm301_vm12, 0, %v300_v54 }
  0x59   :  { %v127_v59 = vsub.s32 32, %v126_v57  ;;  %v128_v60 = vshll.u32 %v119_v47, %v126_v57  ;;  %v131_v61 = vsub.s32 4294967266, %v126_v57  ;;  %v303_v6 = vmin.u32 %v226_v62, %v224_v58 }
  0x5a   :  { %v253_v47 = vadd.s32 3, %v249_v42 }
  0x5b   :  { %v129_v63 = vshrl.u32 %v111_v56, %v127_v59  ;;  %v132_v5 = vadd.s32 127, %v131_v61  ;;  %v228_v10 = vclz %v303_v6  ;;  %v272_v61 = vld [vmem:[#allocation7] sm:$0xf] }
  0x5c   :  { %v254_v45 = vand.u32 3, %v253_v47 }
  0x5d   :  { %v130_v8 = vor.u32 %v129_v63, %v128_v60  ;;  %v133_v9 = vshll.u32 %v132_v5, 23  ;;  %v304_v13 = vadd.s32 4294967294, %v228_v10  ;;  %v264_v5 = vld [vmem:[#allocation5] sm:$0xf] }
  0x5e   :  { %vm259_vm6 = vcmp.eq.s32.totalorder %v254_v45, 2  ;;  %vm256_vm7 = vcmp.eq.s32.totalorder %v254_v45, 0  ;;  %vm255_vm8 = vcmp.lt.s32.totalorder %v254_v45, 2 }
  0x5f   :  { %v134_v11 = vor.u32 4788187, %v133_v9  ;;  %v137_v12 = vcvt.s32.f32 %v130_v8  ;;  %vm305_vm13 = vcmp.lt.s32.totalorder %v304_v13, 0 }
  0x60   :  { %v231_v3 = vsel %vm305_vm13, 0, %v304_v13 }
  0x61   :  { %v135_v15 = vand.u32 2147483647, %v134_v11  ;;  %v232_v17 = vsub.s32 32, %v231_v3  ;;  %v233_v18 = vshll.u32 %v224_v58, %v231_v3  ;;  %v236_v21 = vsub.s32 4294967266, %v231_v3 }
  0x63   :  { %v138_v0 = vmul.f32 %v137_v12, %v135_v15  ;;  %v234_v24 = vshrl.u32 %v216_v16, %v232_v17  ;;  %v237_v25 = vadd.s32 127, %v236_v21 }
  0x65   :  { %v139_v19 = vxor.u32 2147483648, %v138_v0  ;;  %v235_v28 = vor.u32 %v234_v24, %v233_v18  ;;  %v238_v29 = vshll.u32 %v237_v25, 23 }
  0x67   :  { %v140_v26 = vsel %vm57_vm14, %v139_v19, %v138_v0  ;;  %v239_v31 = vor.u32 4788187, %v238_v29  ;;  %v242_v32 = vcvt.s32.f32 %v235_v28 }
  0x68   :  { %v143_v27 = vsel %vm519_vm15, %v457_v1, %v140_v26 }
  0x69   :  { %324 = vcosq.f32 %v143_v27  ;;  %v240_v2 = vand.u32 2147483647, %v239_v31 }
  0x6a   :  { %326 = vsinq.f32 %v143_v27 }
  0x6b   :  { %v243_v14 = vmul.f32 %v242_v32, %v240_v2 }
  0x6d   :  { %v244_v36 = vxor.u32 2147483648, %v243_v14 }
  0x6f   :  { %v245_v37 = vsel %vm162_vm0, %v244_v36, %v243_v14 }
  0x70   :  { %v248_v39 = vsel %vm531_vm1, %v462_v4, %v245_v37 }
  0x71   :  { %328 = vcosq.f32 %v248_v39 }
  0x72   :  { %330 = vsinq.f32 %v248_v39 }
  0x76   :  { %v325_v41 = vpop.eup %324 }
  0x77   :  { %v327_v43 = vpop.eup %326  ;;  %v155_v44 = vxor.u32 2147483648, %v325_v41 }
  0x78   :  { %v152_v7 = vxor.u32 2147483648, %v327_v43 }
  0x79   :  { %v156_v49 = vsel %vm154_vm3, %v155_v44, %v327_v43 }
  0x7a   :  { %v153_v48 = vsel %vm151_vm2, %v325_v41, %v152_v7 }
  0x7b   :  { %v157_v51 = vsel %vm150_vm4, %v153_v48, %v156_v49 }
  0x7c   :  { %v158_v54 = vsel %vm147_vm5, nan, %v157_v51 }
  0x7d   :  { %v277_v59 = vrot.slane %v158_v54, %v268_v52 }
  0x7e   :  { %v329_v53 = vpop.eup %328 }
  0x7f   :  { %v331_v55 = vpop.eup %330  ;;  %v260_v56 = vxor.u32 2147483648, %v329_v53  ;;  %v279_v6 = vmul.f32 %v277_v59, %v272_v61 }
  0x80   :  { %v257_v57 = vxor.u32 2147483648, %v331_v55 }
  0x81   :  { %v261_v58 = vsel %vm259_vm6, %v260_v56, %v331_v55 }
  0x82   :  { %v258_v60 = vsel %vm256_vm7, %v329_v53, %v257_v57 }
  0x83   :  { %v262_v62 = vsel %vm255_vm8, %v258_v60, %v261_v58 }
  0x84   :  { %v263_v63 = vsel %vm252_vm9, nan, %v262_v62 }
  0x85   :  { %v269_v1 = vrot.slane %v263_v63, %v268_v52 }
  0x87   :  { %v271_v8 = vmul.f32 %v269_v1, %v264_v5 }
  0x89   :  { %v280_v9 = vadd.f32 %v279_v6, %v271_v8 }
  0x8b   :  { %281 = vst [vmem:[#allocation8] sm:$0xf] %v280_v9 }
  0x8c   :  { %403 = shalt.err (!%p400_p5)
}
  0x8d   :  { %291 = dma.vmem_to_hbm [thread:$0]  %s289_s2, 64, %s548_s3, [#allocation4]  }
  0x8e   :  { %416 = dma.done.wait [#allocation4], 64  }
  0x8f   :  { %417 = vsyncadd [#allocation4], 4294967232 }
  0x90   :  { %295 = vsyncpa [#allocation3], 1 }
  0x91   :  { %296 = vsyncpa [#allocation6], 1 }
  0x92   :  { %297 = vsyncpa [#allocation4], 1 }

</bundles_post_ra>
